<compile_context>
chip_gen: v5e
topology: v5e:2x2
jax: 0.10.0
libtpu: 0.0.40
codegen_flags: <defaults>
</compile_context>

<pallas_src>
import jax
import jax.numpy as jnp
import numpy as np
from jax.experimental import pallas as pl
from jax.experimental.pallas import tpu as pltpu

# ---- synthetic state-representation cardinalities (deterministic) ----------
NUM_CARD_COUNTS  = 4
NUM_CARD_COLORS  = 8
NUM_CARD_SHAPES  = 8
NUM_CARD_SELECT  = 3
NUM_LEADER_ROT   = 6
NUM_FOLLOWER_ROT = 6
PROPERTY_SIZES = (NUM_CARD_COUNTS, NUM_CARD_COLORS, NUM_CARD_SHAPES,
                  NUM_CARD_SELECT, NUM_LEADER_ROT, NUM_FOLLOWER_ROT)
NUM_PROPERTIES = len(PROPERTY_SIZES)          # 6
VOCAB = sum(PROPERTY_SIZES)                   # 35
EMBEDDING_SIZE = 32


def _round_up(x, m):
    return ((x + m - 1) // m) * m


# contraction dim padded only to the sublane multiple (8), not to 128:
# the VPU compare work scales with this, the MXU pads internally for free.
VOCAB_PAD = _round_up(VOCAB, 8)               # 40

# per-property offsets into the shared vocabulary (prefix sums) -- static
_OFFSETS = []
_acc = 0
for _s in PROPERTY_SIZES:
    _OFFSETS.append(_acc)
    _acc += _s
_OFFSETS = tuple(_OFFSETS)                    # (0, 4, 12, 20, 23, 29)


def _embed_sum_kernel(cc_ref, col_ref, sh_ref, sel_ref, lr_ref, fr_ref,
                      table_t_ref, out_ref):
    # prop refs:   (1, 1, tile_hw) int32, raw (un-offset) property indices
    # table_t_ref: (E, VOCAB_PAD) f32, columns >= VOCAB are zero
    # out_ref:     (1, E, tile_hw) f32
    tile_hw = out_ref.shape[2]

    # vocab-id iota along the sublane (contraction) axis
    iota_v = jax.lax.broadcasted_iota(jnp.int32, (VOCAB_PAD, tile_hw), 0)

    # multihot(v, n) = OR_p [ v == idx_p(n) + offset_p ]   (ranges disjoint)
    hit = None
    prop_refs = (cc_ref, col_ref, sh_ref, sel_ref, lr_ref, fr_ref)
    for p_ref, off in zip(prop_refs, _OFFSETS):
        row = p_ref[0, :, :]                       # (1, tile_hw) int32
        if off:
            row = row + off                        # cheap: 1 sublane-row add
        m = iota_v == row                          # broadcast over sublanes
        hit = m if hit is None else jnp.logical_or(hit, m)
    multihot = hit.astype(jnp.float32)             # single bool->f32 convert

    # sum_p table[idx_p]^T  ==  table^T @ multihot   (MXU, lane-dense result)
    out_ref[0, :, :] = jnp.dot(table_t_ref[...], multihot,
                               preferred_element_type=jnp.float32)


def dynamic_environment_embedder(table, card_counts, card_colors, card_shapes,
                                 card_selections, leader_rotations,
                                 follower_rotations, *, max_tile_hw=2048):
    B, H, W = card_counts.shape
    HW = H * W

    # lane-dense tile over the spatial dim; the batch grid axis keeps >=2
    # parallel steps for the two v7x TensorCores.
    tile_hw = min(max_tile_hw, _round_up(HW, 128))
    hw_pad = _round_up(HW, tile_hw)
    num_hw_tiles = hw_pad // tile_hw

    props = [card_counts, card_colors, card_shapes, card_selections,
             leader_rotations, follower_rotations]
    props = [p.astype(jnp.int32).reshape(B, 1, HW) for p in props]
    if hw_pad != HW:
        # padded positions never match any vocab row (pad value + offset is
        # always >= VOCAB_PAD); their output columns are sliced off below.
        props = [jnp.pad(p, ((0, 0), (0, 0), (0, hw_pad - HW)),
                         constant_values=2 * VOCAB_PAD) for p in props]

    # transposed, sublane-padded table: (E, VOCAB_PAD), cols >= VOCAB are zero
    table_t = jnp.zeros((EMBEDDING_SIZE, VOCAB_PAD), jnp.float32)
    table_t = table_t.at[:, :VOCAB].set(table.astype(jnp.float32).T)

    prop_spec = pl.BlockSpec((1, 1, tile_hw), lambda b, t: (b, 0, t))
    table_spec = pl.BlockSpec((EMBEDDING_SIZE, VOCAB_PAD), lambda b, t: (0, 0))

    out = pl.pallas_call(
        _embed_sum_kernel,
        out_shape=jax.ShapeDtypeStruct((B, EMBEDDING_SIZE, hw_pad),
                                       jnp.float32),
        grid_spec=pltpu.PrefetchScalarGridSpec(
            num_scalar_prefetch=0,
            grid=(B, num_hw_tiles),
            in_specs=[prop_spec] * NUM_PROPERTIES + [table_spec],
            out_specs=pl.BlockSpec((1, EMBEDDING_SIZE, tile_hw),
                                   lambda b, t: (b, 0, t)),
        ),
        compiler_params=pltpu.CompilerParams(
            dimension_semantics=("parallel", "parallel")),
    )(*props, table_t)

    # (B, E, HW) -> (B, E, H, W): contiguous reshape, no transpose pass.
    return out[:, :, :HW].reshape(B, EMBEDDING_SIZE, H, W)


def _reference(table, *props):
    # pure-JAX reference: offset, gather, sum over properties -> (B, E, H, W)
    embs = [table[p.astype(jnp.int32) + o] for p, o in zip(props, _OFFSETS)]
    summed = sum(embs)                            # (B, H, W, E)
    return jnp.transpose(summed, (0, 3, 1, 2))


if __name__ == "__main__":
    key = jax.random.PRNGKey(0)
    k_tab, *k_props = jax.random.split(key, 1 + NUM_PROPERTIES)

    B, H, W = 2, 16, 16
    # deterministic embedding table (synthetic WordEmbedder weights)
    table = jax.random.normal(k_tab, (VOCAB, EMBEDDING_SIZE), jnp.float32) * 0.1

    # deterministic property index grids, each within its own cardinality
    prop_inputs = [
        jax.random.randint(k, (B, H, W), 0, size, dtype=jnp.int32)
        for k, size in zip(k_props, PROPERTY_SIZES)
    ]

    out = dynamic_environment_embedder(table, *prop_inputs)
    out = jax.block_until_ready(out)

    ref = jax.block_until_ready(_reference(table, *prop_inputs))
    assert out.shape == (B, EMBEDDING_SIZE, H, W), out.shape
    np.testing.assert_allclose(np.asarray(out), np.asarray(ref),
                               rtol=1e-5, atol=1e-5)
    print("KERNEL_OK")
</pallas_src>

<mosaic_0001>
module attributes {stable_mosaic.version = 11 : i64} {
  func.func @_embed_sum_kernel(%arg0: i32, %arg1: i32, %arg2: memref<1x1x256xi32, #tpu.memory_space<vmem>>, %arg3: memref<1x1x256xi32, #tpu.memory_space<vmem>>, %arg4: memref<1x1x256xi32, #tpu.memory_space<vmem>>, %arg5: memref<1x1x256xi32, #tpu.memory_space<vmem>>, %arg6: memref<1x1x256xi32, #tpu.memory_space<vmem>>, %arg7: memref<1x1x256xi32, #tpu.memory_space<vmem>>, %arg8: memref<32x40xf32, #tpu.memory_space<vmem>>, %arg9: memref<1x32x256xf32, #tpu.memory_space<vmem>>) attributes {dimension_semantics = [#tpu.dimension_semantics<parallel>, #tpu.dimension_semantics<parallel>], iteration_bounds = array<i64: 2, 1>, scalar_prefetch = 0 : i64, scratch_operands = 0 : i64, tpu.core_type = #tpu.core_type<tc>, window_params = [{transform_indices = @transform_0, window_bounds = array<i64: 1, 1, 256>}, {transform_indices = @transform_1, window_bounds = array<i64: 1, 1, 256>}, {transform_indices = @transform_2, window_bounds = array<i64: 1, 1, 256>}, {transform_indices = @transform_3, window_bounds = array<i64: 1, 1, 256>}, {transform_indices = @transform_4, window_bounds = array<i64: 1, 1, 256>}, {transform_indices = @transform_5, window_bounds = array<i64: 1, 1, 256>}, {pipeline_mode = #tpu.pipeline_mode<synchronous>, transform_indices = @transform_6, window_bounds = array<i64: 32, 40>}, {transform_indices = @transform_7, window_bounds = array<i64: 1, 32, 256>}]} {
    %0 = tpu.iota {dimensions = array<i32: 0>} : vector<40x256xi32>
    %c0 = arith.constant 0 : index
    %c0_0 = arith.constant 0 : index
    %c0_1 = arith.constant 0 : index
    %1 = vector.load %arg2[%c0, %c0_0, %c0_1] : memref<1x1x256xi32, #tpu.memory_space<vmem>>, vector<1x1x256xi32>
    %2 = vector.shape_cast %1 : vector<1x1x256xi32> to vector<1x256xi32>
    %3 = vector.broadcast %2 : vector<1x256xi32> to vector<40x256xi32>
    %4 = arith.cmpi eq, %0, %3 : vector<40x256xi32>
    %c0_2 = arith.constant 0 : index
    %c0_3 = arith.constant 0 : index
    %c0_4 = arith.constant 0 : index
    %5 = vector.load %arg3[%c0_2, %c0_3, %c0_4] : memref<1x1x256xi32, #tpu.memory_space<vmem>>, vector<1x1x256xi32>
    %6 = vector.shape_cast %5 : vector<1x1x256xi32> to vector<1x256xi32>
    %c4_i32 = arith.constant 4 : i32
    %7 = vector.broadcast %c4_i32 : i32 to vector<1x256xi32>
    %8 = arith.addi %6, %7 : vector<1x256xi32>
    %9 = vector.broadcast %8 : vector<1x256xi32> to vector<40x256xi32>
    %10 = arith.cmpi eq, %0, %9 : vector<40x256xi32>
    %11 = arith.ori %4, %10 : vector<40x256xi1>
    %c0_5 = arith.constant 0 : index
    %c0_6 = arith.constant 0 : index
    %c0_7 = arith.constant 0 : index
    %12 = vector.load %arg4[%c0_5, %c0_6, %c0_7] : memref<1x1x256xi32, #tpu.memory_space<vmem>>, vector<1x1x256xi32>
    %13 = vector.shape_cast %12 : vector<1x1x256xi32> to vector<1x256xi32>
    %c12_i32 = arith.constant 12 : i32
    %14 = vector.broadcast %c12_i32 : i32 to vector<1x256xi32>
    %15 = arith.addi %13, %14 : vector<1x256xi32>
    %16 = vector.broadcast %15 : vector<1x256xi32> to vector<40x256xi32>
    %17 = arith.cmpi eq, %0, %16 : vector<40x256xi32>
    %18 = arith.ori %11, %17 : vector<40x256xi1>
    %c0_8 = arith.constant 0 : index
    %c0_9 = arith.constant 0 : index
    %c0_10 = arith.constant 0 : index
    %19 = vector.load %arg5[%c0_8, %c0_9, %c0_10] : memref<1x1x256xi32, #tpu.memory_space<vmem>>, vector<1x1x256xi32>
    %20 = vector.shape_cast %19 : vector<1x1x256xi32> to vector<1x256xi32>
    %c20_i32 = arith.constant 20 : i32
    %21 = vector.broadcast %c20_i32 : i32 to vector<1x256xi32>
    %22 = arith.addi %20, %21 : vector<1x256xi32>
    %23 = vector.broadcast %22 : vector<1x256xi32> to vector<40x256xi32>
    %24 = arith.cmpi eq, %0, %23 : vector<40x256xi32>
    %25 = arith.ori %18, %24 : vector<40x256xi1>
    %c0_11 = arith.constant 0 : index
    %c0_12 = arith.constant 0 : index
    %c0_13 = arith.constant 0 : index
    %26 = vector.load %arg6[%c0_11, %c0_12, %c0_13] : memref<1x1x256xi32, #tpu.memory_space<vmem>>, vector<1x1x256xi32>
    %27 = vector.shape_cast %26 : vector<1x1x256xi32> to vector<1x256xi32>
    %c23_i32 = arith.constant 23 : i32
    %28 = vector.broadcast %c23_i32 : i32 to vector<1x256xi32>
    %29 = arith.addi %27, %28 : vector<1x256xi32>
    %30 = vector.broadcast %29 : vector<1x256xi32> to vector<40x256xi32>
    %31 = arith.cmpi eq, %0, %30 : vector<40x256xi32>
    %32 = arith.ori %25, %31 : vector<40x256xi1>
    %c0_14 = arith.constant 0 : index
    %c0_15 = arith.constant 0 : index
    %c0_16 = arith.constant 0 : index
    %33 = vector.load %arg7[%c0_14, %c0_15, %c0_16] : memref<1x1x256xi32, #tpu.memory_space<vmem>>, vector<1x1x256xi32>
    %34 = vector.shape_cast %33 : vector<1x1x256xi32> to vector<1x256xi32>
    %c29_i32 = arith.constant 29 : i32
    %35 = vector.broadcast %c29_i32 : i32 to vector<1x256xi32>
    %36 = arith.addi %34, %35 : vector<1x256xi32>
    %37 = vector.broadcast %36 : vector<1x256xi32> to vector<40x256xi32>
    %38 = arith.cmpi eq, %0, %37 : vector<40x256xi32>
    %39 = arith.ori %32, %38 : vector<40x256xi1>
    %40 = arith.extui %39 : vector<40x256xi1> to vector<40x256xi32>
    %41 = arith.sitofp %40 : vector<40x256xi32> to vector<40x256xf32>
    %c0_17 = arith.constant 0 : index
    %c0_18 = arith.constant 0 : index
    %42 = vector.load %arg8[%c0_17, %c0_18] : memref<32x40xf32, #tpu.memory_space<vmem>>, vector<32x40xf32>
    %cst = arith.constant dense<0.000000e+00> : vector<32x256xf32>
    %43 = tpu.matmul %42, %41, %cst {dimension_numbers = #tpu.dot_dimension_numbers<[1], [0], [0], [1], [0, 0, 1, 1], [], []>} : vector<32x40xf32>, vector<40x256xf32>, vector<32x256xf32> -> vector<32x256xf32>
    %c0_19 = arith.constant 0 : index
    %c0_20 = arith.constant 0 : index
    %c0_21 = arith.constant 0 : index
    %44 = vector.load %arg9[%c0_19, %c0_20, %c0_21] : memref<1x32x256xf32, #tpu.memory_space<vmem>>, vector<1x32x256xf32>
    %45 = vector.shape_cast %44 : vector<1x32x256xf32> to vector<32x256xf32>
    %46 = vector.shape_cast %43 : vector<32x256xf32> to vector<1x32x256xf32>
    tpu.vector_store %arg9[%c0_19, %c0_20, %c0_21], %46 {strides = array<i32>} : memref<1x32x256xf32, #tpu.memory_space<vmem>>, vector<1x32x256xf32>,
    return
  }
  func.func @transform_0(%arg0: i32, %arg1: i32) -> (i32, i32, i32) {
    %c0_i32 = arith.constant 0 : i32
    %c0_i32_0 = arith.constant 0 : i32
    return %arg0, %c0_i32, %arg1 : i32, i32, i32
  }
  func.func @transform_1(%arg0: i32, %arg1: i32) -> (i32, i32, i32) {
    %c0_i32 = arith.constant 0 : i32
    %c0_i32_0 = arith.constant 0 : i32
    return %arg0, %c0_i32, %arg1 : i32, i32, i32
  }
  func.func @transform_2(%arg0: i32, %arg1: i32) -> (i32, i32, i32) {
    %c0_i32 = arith.constant 0 : i32
    %c0_i32_0 = arith.constant 0 : i32
    return %arg0, %c0_i32, %arg1 : i32, i32, i32
  }
  func.func @transform_3(%arg0: i32, %arg1: i32) -> (i32, i32, i32) {
    %c0_i32 = arith.constant 0 : i32
    %c0_i32_0 = arith.constant 0 : i32
    return %arg0, %c0_i32, %arg1 : i32, i32, i32
  }
  func.func @transform_4(%arg0: i32, %arg1: i32) -> (i32, i32, i32) {
    %c0_i32 = arith.constant 0 : i32
    %c0_i32_0 = arith.constant 0 : i32
    return %arg0, %c0_i32, %arg1 : i32, i32, i32
  }
  func.func @transform_5(%arg0: i32, %arg1: i32) -> (i32, i32, i32) {
    %c0_i32 = arith.constant 0 : i32
    %c0_i32_0 = arith.constant 0 : i32
    return %arg0, %c0_i32, %arg1 : i32, i32, i32
  }
  func.func @transform_6(%arg0: i32, %arg1: i32) -> (i32, i32) {
    %c0_i32 = arith.constant 0 : i32
    %c0_i32_0 = arith.constant 0 : i32
    %c0_i32_1 = arith.constant 0 : i32
    return %c0_i32, %c0_i32_0 : i32, i32
  }
  func.func @transform_7(%arg0: i32, %arg1: i32) -> (i32, i32, i32) {
    %c0_i32 = arith.constant 0 : i32
    %c0_i32_0 = arith.constant 0 : i32
    return %arg0, %c0_i32, %arg1 : i32, i32, i32
  }
}

</mosaic_0001>

<bundles_post_ra>
// kernel: tpu_custom_call.1
= control target key start
LH: loop header
LB: loop body
LE: loop exit
PB: predicated region body
PF: predicated region fallthrough
CT: control target
= control target key end

     0   :  { %s1817_s0 = inlined_call_operand.hbm [shape: s32[2,1,256], index: 0, kind: input, shape index: {}]   ;;  %s1818_s1 = inlined_call_operand.hbm [shape: s32[2,1,256], index: 1, kind: input, shape index: {}]   ;;  %s1819_s2 = inlined_call_operand.hbm [shape: s32[2,1,256], index: 2, kind: input, shape index: {}]   ;;  %s1820_s3 = inlined_call_operand.hbm [shape: s32[2,1,256], index: 3, kind: input, shape index: {}]   ;;  %s1821_s4 = inlined_call_operand.hbm [shape: s32[2,1,256], index: 4, kind: input, shape index: {}]   ;;  %s1822_s5 = inlined_call_operand.vmem [shape: s32[2,1,256], index: 5, kind: input, shape index: {}]   ;;  %s1823_s6 = inlined_call_operand.hbm [shape: f32[32,40], index: 6, kind: input, shape index: {}]   ;;  %s1824_s7 = inlined_call_operand.hbm [shape: f32[2,32,256], index: 7, kind: output, shape index: {}]  }
   0x1   :  { %1832 = sst [smem:[#allocation25_spill]] %s1817_s0 }
   0x2   :  { %1833 = sst [smem:[#allocation26_spill]] %s1818_s1 }
   0x3   :  { %1834 = sst [smem:[#allocation27_spill]] %s1820_s3 }
   0x4   :  { %1835 = sst [smem:[#allocation28_spill]] %s1823_s6 }
   0x5   :  { %12 = vsyncpa [#allocation3], 0 }
   0x6   :  { %14 = vsyncpa [#allocation3 + $0x1], 0 }
   0x7   :  { %15 = vsyncpa [#allocation6], 0 }
   0x8   :  { %17 = vsyncpa [#allocation6 + $0x1], 0 }
   0x9   :  { %18 = vsyncpa [#allocation9], 0 }
   0xa   :  { %20 = vsyncpa [#allocation9 + $0x1], 0 }
   0xb   :  { %21 = vsyncpa [#allocation12], 0 }
   0xc   :  { %22 = vsyncpa [#allocation4], 0 }
   0xd   :  { %24 = vsyncpa [#allocation4 + $0x1], 0  ;;  %s1479_s24 = smov 0   ;;  %s1481_s25 = smov 0  }
   0xe   :  { %s1483_s26 = smov 0   ;;  %s1485_s27 = smov 0  }
   0xf   :  { %s1487_s28 = smov 0   ;;  %s1489_s29 = smov 0  }
  0x10 LB: > { %1836 = sst [smem:[#allocation19_spill]] %s1411_s24  ;;  %s42_s30 = sadd.s32 1, %s1427_s28  ;;  %s1431_s29 = sphi %s1489_s29, %s30_s29   ;;  %s1427_s28 = sphi %s1487_s28, %s1857_s28   ;;  %s1423_s27 = sphi %s1485_s27, %s1856_s27   ;;  %s1419_s26 = sphi %s1483_s26, %s1860_s26   ;;  %s1415_s25 = sphi %s1481_s25, %s1859_s25   ;;  %s1411_s24 = sphi %s1479_s24, %s1858_s24  }
  0x11   : > { %1837 = sst [smem:[#allocation20_spill]] %s1427_s28  ;;  %s51_s8 = sadd.s32 1, %s1419_s26 }
  0x12   : > { %1838 = sst [smem:[#allocation21_spill]] %s1431_s29  ;;  %p44_p0 = scmp.ge.s32.totalorder %s42_s30, 2 }
  0x13   : > { %p58_p1 = scmp.ne.s32.totalorder %s1419_s26, %s1415_s25  ;;  %p59_p2 = scmp.eq.s32.totalorder %s1431_s29, 0 }
  0x14   : > { %p1005_p3 = scmp.ge.s32.totalorder %s1431_s29, 2  ;;  %s1862_s30 = smov (%p44_p0, %s42_s30), 0 }
  0x15   : > { %1839 = sst [smem:[#allocation22_spill]] %s1862_s30  ;;  %p60_p4 = por %p59_p2, %p58_p1 }
  0x16   : > { %p1100_p5 = scmp.lt.s32.totalorder %s1431_s29, 2  ;;  %s46_s9 = ssub.s32 %s1427_s28, %s1862_s30 }
  0x17   : > { %s1825_s10 = sand.u32 1, %s1419_s26   ;;  %p49_p6 = scmp.eq.s32.totalorder %s46_s9, 0 }
  0x18   : > { %s1526_s11 = sshll.u32 %s1825_s10, 1  ;;  %s1529_s12 = sshll.u32 %s1427_s28, 1 }
  0x19   : > { %p1531_p7 = pnand %p1100_p5, %p60_p4  ;;  %s312_s15 = sand.u32 1, %s1431_s29  }
  0x1a   : > { %s1536_s14 = scalar_select %p49_p6, %s1419_s26, %s51_s8  }
  0x1b   : > { %s1842_s1 = sld [smem:[#allocation26_spill]]  ;;  %s316_s19 = scalar_lea.vmem [#allocation5], %s1526_s11 }
  0x1c   : > { %1841 = sst [smem:[#allocation23_spill]] %s1536_s14  ;;  %s326_s20 = sshll.u32 %s316_s19, 4  ;;  %s327_s20 = int_to_ptr.vmem [resolvable:$true] %s326_s20 }
  0x1d   : > { %s1544_s22 = scalar_lea.sflag [#allocation6], %s312_s15  ;;  %s1843_s3 = sld [smem:[#allocation27_spill]] }
  0x1e   : > { %s358_s17 = scalar_lea.vmem [#allocation8], %s1526_s11  ;;  %s1560_s10 = sadd.s32 4294967295, %s1431_s29  }
  0x1f   : > { %s368_s19 = sshll.u32 %s358_s17, 4  ;;  %p64_p8 = scmp.ne.s32.totalorder %s1415_s25, %s1411_s24  ;;  %s369_s19 = int_to_ptr.vmem [resolvable:$true] %s368_s19 }
  0x20   : > { %p65_p9 = scmp.eq.s32.totalorder %s1560_s10, 0  ;;  %p251_p10 = scmp.eq.s32.totalorder %s1560_s10, 1 }
  0x21   : > { %s322_s18 = scalar_lea.hbm %s1842_s1, %s1529_s12  ;;  %p1003_p13 = scmp.ge.s32.totalorder %s1431_s29, 1 }
  0x22   : > { %s324_s21 = sshll.u32 %s322_s18, 4  ;;  %s1554_s18 = scalar_lea.sflag [#allocation9], %s312_s15  ;;  %s325_s21 = int_to_ptr.hbm [resolvable:$true] %s324_s21 }
  0x23   : > { %1085 = dma.hbm_to_vmem [thread:$0]  (!%p1531_p7), %s325_s21, 32, %s327_s20, %s1544_s22  }
  0x24   : > { %s364_s9 = scalar_lea.hbm %s1843_s3, %s1529_s12  ;;  %s1002_s20 = sadd.s32 4294967294, %s1431_s29  }
  0x25   : > { %s366_s16 = sshll.u32 %s364_s9, 4  ;;  %p257_p11 = scmp.eq.s32.totalorder %s1002_s20, 1  ;;  %s367_s16 = int_to_ptr.hbm [resolvable:$true] %s366_s16 }
  0x26   : > { %1091 = dma.hbm_to_vmem [thread:$0]  (!%p1531_p7), %s367_s16, 32, %s369_s19, %s1554_s18  }
  0x27   : > { %p1569_p12 = por %p65_p9, %p64_p8  ;;  %p1577_p0 = por %p251_p10, %p58_p1 }
  0x28   : > { %p1581_p2 = por %p257_p11, %p64_p8  ;;  %p264_p4 = scmp.lt.s32.totalorder %s1431_s29, 3 }
  0x29   : > { %s1848_s6 = sld [smem:[#allocation28_spill]]  ;;  %s1433_s19 = smov [#allocation11]  }
  0x2a   : > { %s1846_s23 = scalar_select %p1581_p2, 1, 0 }
  0x2b   : > { %p1589_p5 = pnand %p1003_p13, %p264_p4  ;;  %s277_s20 = sshll.u32 %s1433_s19, 4  ;;  %s278_s20 = int_to_ptr.vmem [resolvable:$true] %s277_s20 }
  0x2c   : > { %1847 = sst [smem:[#allocation24_spill]] %s1846_s23  ;;  %s295_s3 = scalar_lea.vmem [#allocation2], %s1526_s11 }
  0x2d   : > { %p1075_p1 = pneg %p1589_p5  ;;  %s1850_s0 = sld [smem:[#allocation25_spill]] }
  0x2e   : > { %s1434_s28 = smov 128   ;;  %s1435_s14 = smov 8  }
  0x2f   : > { %s275_s16 = sshll.u32 %s1848_s6, 4  ;;  %p1076_p6 = pnand %p1075_p1, %p65_p9  ;;  %s276_s16 = int_to_ptr.hbm [resolvable:$true] %s275_s16 }
  0x30   : > { %s305_s6 = sshll.u32 %s295_s3, 4  ;;  %s1851_s19 = sand.u32 1, %s1419_s26   ;;  %s306_s6 = int_to_ptr.vmem [resolvable:$true] %s305_s6 }
  0x31   : > { %1078 = dma.hbm_to_vmem [thread:$0]  (!%p1076_p6), %s276_s16, 512, %s278_s20, [#allocation12], %s1434_s28, %s1434_s28, %s1435_s14  }
  0x32   : > { %s292_s29 = scalar_lea.sflag [#allocation3], %s1851_s19  ;;  %s337_s3 = scalar_lea.vmem [#allocation7], %s1526_s11 }
  0x33   : > { %s301_s9 = scalar_lea.hbm %s1850_s0, %s1529_s12  ;;  %s343_s0 = scalar_lea.hbm %s1819_s2, %s1529_s12 }
  0x34   : > { %s303_s30 = sshll.u32 %s301_s9, 4  ;;  %s345_s23 = sshll.u32 %s343_s0, 4  ;;  %s304_s30 = int_to_ptr.hbm [resolvable:$true] %s303_s30  ;;  %s346_s23 = int_to_ptr.hbm [resolvable:$true] %s345_s23 }
  0x35   : > { %1082 = dma.hbm_to_vmem [thread:$0]  (!%p1531_p7), %s304_s30, 32, %s306_s6, %s292_s29  }
  0x36   : > { %s347_s24 = sshll.u32 %s337_s3, 4  ;;  %s385_s16 = scalar_lea.hbm %s1821_s4, %s1529_s12  ;;  %s348_s24 = int_to_ptr.vmem [resolvable:$true] %s347_s24 }
  0x37   : > { %1088 = dma.hbm_to_vmem [thread:$0]  (!%p1531_p7), %s346_s23, 32, %s348_s24, %s1544_s22  }
  0x38   : > { %s387_s20 = sshll.u32 %s385_s16, 4  ;;  %s379_s9 = scalar_lea.vmem [#allocation10], %s1526_s11  ;;  %s388_s20 = int_to_ptr.hbm [resolvable:$true] %s387_s20 }
  0x39   : > { %s389_s19 = sshll.u32 %s379_s9, 4  ;;  %410 = sbr.rel (%p1589_p5) target bundleno = 274 (0x112), region = 48  ;;  %s390_s19 = int_to_ptr.vmem [resolvable:$true] %s389_s19 }
  0x3a   : > { %1094 = dma.hbm_to_vmem [thread:$0]  (!%p1531_p7), %s388_s20, 32, %s390_s19, %s1554_s18  }
  0x3b   : > { %s1625_s0 = sand.u32 (!%p1589_p5), 1, %s1415_s25  }
  0x3c   : > { %s1628_s6 = sshll.u32 (!%p1589_p5), %s1625_s0, 1  ;;  %s413_s24 = scalar_lea.sflag (!%p1589_p5), [#allocation3], %s1625_s0 }
  0x3d   : > { %s416_s29 = scalar_lea.vmem (!%p1589_p5), [#allocation2], %s1628_s6 }
  0x3e   : > { %1390 = dma.done.wait (%p1569_p12), %s413_s24, 32  }
  0x3f   : > { %1392 = vsyncadd (%p1569_p12), %s413_s24, 4294967264  ;;  %s422_s30 = sand.u32 1, %s1560_s10   ;;  %s426_s12 = scalar_lea.vmem [#allocation5], %s1628_s6 }
  0x40   : > { %s423_s11 = scalar_lea.sflag [#allocation6], %s422_s30 }
  0x41   : > { %1394 = dma.done.wait (%p1569_p12), %s423_s11, 64  }
  0x42   : > { %1396 = vsyncadd (%p1569_p12), %s423_s11, 4294967232  ;;  %s436_s13 = scalar_lea.vmem [#allocation7], %s1628_s6  ;;  %s443_s22 = scalar_lea.sflag [#allocation9], %s422_s30 }
  0x43   : > { %s446_s18 = scalar_lea.vmem [#allocation8], %s1628_s6 }
  0x44   : > { %1398 = dma.done.wait (%p1569_p12), %s443_s22, 64  }
  0x45   : > { %1400 = vsyncadd (%p1569_p12), %s443_s22, 4294967232  ;;  %s456_s23 = scalar_lea.vmem [#allocation10], %s1628_s6 }
  0x46   : > { %1402 = dma.done.wait (%p65_p9), [#allocation12], 512  }
  0x47   : > { %1404 = vsyncadd (%p65_p9), [#allocation12], 4294966784  ;;  %p527_p7 = scmp.lt.s32.totalorder %s1423_s27, 1  ;;  %v536_v0 = vlaneseq  ;;  %v542_v3 = vld [vmem:[%s416_s29] sm:$0x3]  ;;  %v1436_v27 = vmov 0.0  }
  0x48   : > { %v555_v4 = vld [vmem:[%s426_s12] sm:$0x3]  ;;  %v579_v5 = vld [vmem:[%s436_s13] sm:$0x3]  ;;  %v1661_v6 = vperm.slane %v542_v3, 0  ;;  %v1670_v18 = vperm.slane %v542_v3, 1 }
  0x49   : > { %s528_s17 = scalar_select %p527_p7, %s1423_s27, 1  ;;  %v1655_v1 = vshrl.u32 %v536_v0, 7  ;;  %v556_v7 = vadd.s32 4, %v555_v4  ;;  %v580_v8 = vadd.s32 12, %v579_v5  ;;  %v603_v9 = vld [vmem:[%s446_s18] sm:$0x3] }
  0x4a   : > { %v604_v10 = vadd.s32 20, %v603_v9  ;;  %v627_v11 = vld [vmem:[%s456_s23] sm:$0x3]  ;;  %v697_v38 = vld [vmem:[#allocation11 + $0x10] sm:$0xff]  ;;  %v695_v39 = vld [vmem:[#allocation11] sm:$0xff]  ;;  %s1023_s10 = sshll.u32 %s1625_s0, 6 }
  0x4b   : > { %s1024_s1 = sshll.u32 %s528_s17, 1  ;;  %v541_v2 = vadd.s32 32, %v1655_v1  ;;  %v1664_v13 = vperm.slane %v556_v7, 0  ;;  %v1666_v14 = vperm.slane %v580_v8, 0  ;;  %v628_v15 = vadd.s32 23, %v627_v11  ;;  %v698_v42 = vld [vmem:[#allocation11 + $0x18] sm:$0xff] }
  0x4c   : > { %s533_s15 = scalar_lea.vmem %s1822_s5, %s1024_s1  ;;  %v1668_v16 = vperm.slane %v604_v10, 0  ;;  %v1672_v19 = vperm.slane %v556_v7, 1  ;;  %v1678_v21 = vperm.slane %v580_v8, 1  ;;  %v1683_v23 = vperm.slane %v604_v10, 1  ;;  %v696_v43 = vld [vmem:[#allocation11 + $0x8] sm:$0xff]  ;;  %s520_s28 = scalar_lea.vmem [#allocation13], %s1023_s10 }
  0x4d   : > { %v651_v12 = vld [vmem:[%s533_s15] sm:$0x3]  ;;  %vm553_vm0 = vcmp.eq.s32.totalorder %v541_v2, %v1661_v6  ;;  %vm567_vm1 = vcmp.eq.s32.totalorder %v541_v2, %v1664_v13  ;;  %vm591_vm2 = vcmp.eq.s32.totalorder %v541_v2, %v1666_v14  ;;  %v1676_v20 = vperm.slane %v628_v15, 0  ;;  %s1048_s14 = sshll.u32 %s1423_s27, 6  ;;  %s793_s19 = sshll.u32 %s520_s28, 4  ;;  %s794_s19 = int_to_ptr.vmem [resolvable:$true] %s793_s19 }
  0x4e   : > { %v652_v17 = vadd.s32 29, %v651_v12  ;;  %vm577_vm3 = vmor %vm553_vm0, %vm567_vm1  ;;  %vm615_vm4 = vcmp.eq.s32.totalorder %v541_v2, %v1668_v16  ;;  %v1686_v24 = vperm.slane %v628_v15, 1  ;;  %vm554_vm9 = vcmp.eq.s32.totalorder %v541_v2, %v1670_v18  ;;  %s792_s9 = scalar_lea.hbm %s1824_s7, %s1048_s14  ;;  %s779_s24 = scalar_lea.sflag [#allocation4], %s1625_s0 }
  0x4f   : > { %vm601_vm5 = vmor %vm577_vm3, %vm591_vm2  ;;  %vm639_vm6 = vcmp.eq.s32.totalorder %v541_v2, %v1676_v20  ;;  %vm568_vm10 = vcmp.eq.s32.totalorder %v541_v2, %v1672_v19  ;;  %vm592_vm12 = vcmp.eq.s32.totalorder %v541_v2, %v1678_v21  ;;  %v540_v26 = vadd.s32 24, %v1655_v1  ;;  %s795_s6 = sshll.u32 %s792_s9, 4  ;;  %s1357_s12 = scalar_lea.hbm %s1824_s7, 128  ;;  %s796_s6 = int_to_ptr.hbm [resolvable:$true] %s795_s6 }
  0x50   : > { %v1681_v22 = vperm.slane %v652_v17, 0  ;;  %vm625_vm7 = vmor %vm601_vm5, %vm615_vm4  ;;  %v1691_v25 = vperm.slane %v652_v17, 1  ;;  %vm616_vm14 = vcmp.eq.s32.totalorder %v541_v2, %v1683_v23  ;;  %vm640_vm0 = vcmp.eq.s32.totalorder %v541_v2, %v1686_v24  ;;  %s1351_s27 = sshra.s32 %s796_s6, 4  ;;  %s1352_s27 = int_to_ptr.hbm [resolvable:$true] %s1351_s27 }
  0x51   : > { %vm649_vm11 = vmor %vm625_vm7, %vm639_vm6  ;;  %vm551_vm4 = vcmp.eq.s32.totalorder %v540_v26, %v1661_v6  ;;  %vm565_vm5 = vcmp.eq.s32.totalorder %v540_v26, %v1664_v13  ;;  %vm589_vm7 = vcmp.eq.s32.totalorder %v540_v26, %v1666_v14  ;;  %v539_v30 = vadd.s32 16, %v1655_v1  ;;  %s1353_s29 = scalar_lea.hbm %s1352_s27, 64  ;;  %p1358_p11 = scmp.lt.s32.totalorder %s1352_s27, %s1824_s7 }
  0x52   : > { %vm663_vm8 = vcmp.eq.s32.totalorder %v541_v2, %v1681_v22  ;;  %vm578_vm15 = vmor %vm554_vm9, %vm568_vm10  ;;  %vm664_vm2 = vcmp.eq.s32.totalorder %v541_v2, %v1691_v25  ;;  %vm637_vm10 = vcmp.eq.s32.totalorder %v540_v26, %v1676_v20  ;;  %v538_v33 = vadd.s32 8, %v1655_v1  ;;  %p1354_p8 = scmp.ne.s32.totalorder %s1352_s27, %s1353_s29  ;;  %p1359_p12 = scmp.lt.s32.totalorder %s1357_s12, %s1353_s29 }
  0x53   : > { %vm673_vm13 = vmor %vm649_vm11, %vm663_vm8  ;;  %vm613_vm11 = vcmp.eq.s32.totalorder %v540_v26, %v1668_v16 }
  0x54   : > { %v1033_v28 = vsel %vm673_vm13, 1.0, %v1436_v27  ;;  %vm602_vm1 = vmor %vm578_vm15, %vm592_vm12  ;;  %vm661_vm13 = vcmp.eq.s32.totalorder %v540_v26, %v1681_v22  ;;  %vm552_vm15 = vcmp.eq.s32.totalorder %v540_v26, %v1670_v18  ;;  %p1355_p9 = pnand %p1354_p8, %p1577_p0  ;;  %p1360_p13 = por %p1359_p12, %p1358_p11 }
  0x55   : > { %1049 = vmatpush.msra.mxu2 %v1033_v28  ;;  %vm626_vm3 = vmor %vm602_vm1, %vm616_vm14  ;;  %723 = vmatpush.msra.mxu0 %v1033_v28 }
  0x56   : > { %vm650_vm6 = vmor %vm626_vm3, %vm640_vm0  ;;  %vm566_vm0 = vcmp.eq.s32.totalorder %v540_v26, %v1672_v19  ;;  %p1356_p10 = pneg %p1355_p9 }
  0x57   : > { %vm674_vm8 = vmor %vm650_vm6, %vm664_vm2  ;;  %vm590_vm2 = vcmp.eq.s32.totalorder %v540_v26, %v1678_v21  ;;  %vm638_vm6 = vcmp.eq.s32.totalorder %v540_v26, %v1686_v24 }
  0x58   : > { %v1034_v29 = vsel %vm674_vm8, 1.0, %v1436_v27  ;;  %vm575_vm9 = vmor %vm551_vm4, %vm565_vm5  ;;  %vm614_vm4 = vcmp.eq.s32.totalorder %v540_v26, %v1683_v23  ;;  %vm662_vm8 = vcmp.eq.s32.totalorder %v540_v26, %v1691_v25  ;;  %p1361_p4 = pnand %p1360_p13, %p1356_p10 }
  0x59   : > { %1054 = vmatpush.msra.mxu3 %v1034_v29  ;;  %vm599_vm12 = vmor %vm575_vm9, %vm589_vm7  ;;  %752 = vmatpush.msra.mxu1 %v1034_v29  ;;  %vm549_vm9 = vcmp.eq.s32.totalorder %v539_v30, %v1661_v6 }
  0x5a   : > { %vm623_vm14 = vmor %vm599_vm12, %vm613_vm11 }
  0x5b   : > { %vm647_vm1 = vmor %vm623_vm14, %vm637_vm10  ;;  %vm563_vm10 = vcmp.eq.s32.totalorder %v539_v30, %v1664_v13 }
  0x5c   : > { %vm671_vm3 = vmor %vm647_vm1, %vm661_vm13  ;;  %vm587_vm13 = vcmp.eq.s32.totalorder %v539_v30, %v1666_v14  ;;  %vm611_vm1 = vcmp.eq.s32.totalorder %v539_v30, %v1668_v16 }
  0x5d   : > { %v1031_v31 = vsel %vm671_vm3, 1.0, %v1436_v27  ;;  %vm576_vm5 = vmor %vm552_vm15, %vm566_vm0  ;;  %vm635_vm0 = vcmp.eq.s32.totalorder %v539_v30, %v1676_v20  ;;  %vm659_vm3 = vcmp.eq.s32.totalorder %v539_v30, %v1681_v22 }
  0x5e   : > { %1050 = vmatpush.msra.mxu2 %v1031_v31  ;;  %vm600_vm7 = vmor %vm576_vm5, %vm590_vm2  ;;  %724 = vmatpush.msra.mxu0 %v1031_v31  ;;  %vm550_vm5 = vcmp.eq.s32.totalorder %v539_v30, %v1670_v18 }
  0x5f   : > { %vm624_vm11 = vmor %vm600_vm7, %vm614_vm4 }
  0x60   : > { %vm648_vm12 = vmor %vm624_vm11, %vm638_vm6  ;;  %vm564_vm6 = vcmp.eq.s32.totalorder %v539_v30, %v1672_v19 }
  0x61   : > { %vm672_vm14 = vmor %vm648_vm12, %vm662_vm8  ;;  %vm588_vm8 = vcmp.eq.s32.totalorder %v539_v30, %v1678_v21  ;;  %vm636_vm12 = vcmp.eq.s32.totalorder %v539_v30, %v1686_v24 }
  0x62   : > { %v1032_v32 = vsel %vm672_vm14, 1.0, %v1436_v27  ;;  %vm573_vm15 = vmor %vm549_vm9, %vm563_vm10  ;;  %vm612_vm9 = vcmp.eq.s32.totalorder %v539_v30, %v1683_v23  ;;  %vm660_vm14 = vcmp.eq.s32.totalorder %v539_v30, %v1691_v25 }
  0x63   : > { %1055 = vmatpush.msra.mxu3 %v1032_v32  ;;  %vm597_vm2 = vmor %vm573_vm15, %vm587_vm13  ;;  %753 = vmatpush.msra.mxu1 %v1032_v32  ;;  %vm547_vm15 = vcmp.eq.s32.totalorder %v538_v33, %v1661_v6 }
  0x64   : > { %vm621_vm4 = vmor %vm597_vm2, %vm611_vm1 }
  0x65   : > { %vm645_vm7 = vmor %vm621_vm4, %vm635_vm0  ;;  %vm561_vm0 = vcmp.eq.s32.totalorder %v538_v33, %v1664_v13 }
  0x66   : > { %vm669_vm11 = vmor %vm645_vm7, %vm659_vm3  ;;  %vm585_vm3 = vcmp.eq.s32.totalorder %v538_v33, %v1666_v14  ;;  %vm609_vm7 = vcmp.eq.s32.totalorder %v538_v33, %v1668_v16 }
  0x67   : > { %v1029_v34 = vsel %vm669_vm11, 1.0, %v1436_v27  ;;  %vm574_vm10 = vmor %vm550_vm5, %vm564_vm6  ;;  %vm633_vm6 = vcmp.eq.s32.totalorder %v538_v33, %v1676_v20  ;;  %vm657_vm11 = vcmp.eq.s32.totalorder %v538_v33, %v1681_v22 }
  0x68   : > { %1051 = vmatpush.msra.mxu2 %v1029_v34  ;;  %vm598_vm13 = vmor %vm574_vm10, %vm588_vm8  ;;  %725 = vmatpush.msra.mxu0 %v1029_v34  ;;  %vm548_vm10 = vcmp.eq.s32.totalorder %v538_v33, %v1670_v18 }
  0x69   : > { %vm622_vm1 = vmor %vm598_vm13, %vm612_vm9 }
  0x6a   : > { %vm646_vm2 = vmor %vm622_vm1, %vm636_vm12  ;;  %vm562_vm12 = vcmp.eq.s32.totalorder %v538_v33, %v1672_v19 }
  0x6b   : > { %vm670_vm4 = vmor %vm646_vm2, %vm660_vm14  ;;  %vm586_vm14 = vcmp.eq.s32.totalorder %v538_v33, %v1678_v21  ;;  %vm610_vm2 = vcmp.eq.s32.totalorder %v538_v33, %v1683_v23 }
  0x6c   : > { %v1030_v35 = vsel %vm670_vm4, 1.0, %v1436_v27  ;;  %vm571_vm5 = vmor %vm547_vm15, %vm561_vm0  ;;  %vm634_vm0 = vcmp.eq.s32.totalorder %v538_v33, %v1686_v24  ;;  %vm658_vm4 = vcmp.eq.s32.totalorder %v538_v33, %v1691_v25 }
  0x6d   : > { %1056 = vmatpush.msra.mxu3 %v1030_v35  ;;  %vm595_vm8 = vmor %vm571_vm5, %vm585_vm3  ;;  %754 = vmatpush.msra.mxu1 %v1030_v35  ;;  %vm545_vm5 = vcmp.eq.s32.totalorder %v1655_v1, %v1661_v6 }
  0x6e   : > { %vm619_vm9 = vmor %vm595_vm8, %vm609_vm7 }
  0x6f   : > { %vm643_vm13 = vmor %vm619_vm9, %vm633_vm6  ;;  %vm559_vm6 = vcmp.eq.s32.totalorder %v1655_v1, %v1664_v13 }
  0x70   : > { %vm667_vm1 = vmor %vm643_vm13, %vm657_vm11  ;;  %vm583_vm11 = vcmp.eq.s32.totalorder %v1655_v1, %v1666_v14  ;;  %vm631_vm13 = vcmp.eq.s32.totalorder %v1655_v1, %v1676_v20 }
  0x71   : > { %v1027_v36 = vsel %vm667_vm1, 1.0, %v1436_v27  ;;  %vm572_vm15 = vmor %vm548_vm10, %vm562_vm12  ;;  %vm607_vm10 = vcmp.eq.s32.totalorder %v1655_v1, %v1668_v16  ;;  %vm655_vm1 = vcmp.eq.s32.totalorder %v1655_v1, %v1681_v22 }
  0x72   : > { %1052 = vmatpush.msra.mxu2 %v1027_v36  ;;  %vm596_vm3 = vmor %vm572_vm15, %vm586_vm14  ;;  %726 = vmatpush.msra.mxu0 %v1027_v36  ;;  %vm546_vm15 = vcmp.eq.s32.totalorder %v1655_v1, %v1670_v18 }
  0x73   : > { %vm620_vm7 = vmor %vm596_vm3, %vm610_vm2 }
  0x74   : > { %vm644_vm8 = vmor %vm620_vm7, %vm634_vm0  ;;  %vm560_vm0 = vcmp.eq.s32.totalorder %v1655_v1, %v1672_v19 }
  0x75   : > { %vm668_vm9 = vmor %vm644_vm8, %vm658_vm4  ;;  %vm584_vm4 = vcmp.eq.s32.totalorder %v1655_v1, %v1678_v21 }
  0x76   : > { %v1028_v37 = vsel %vm668_vm9, 1.0, %v1436_v27  ;;  %vm569_vm12 = vmor %vm545_vm5, %vm559_vm6  ;;  %vm608_vm5 = vcmp.eq.s32.totalorder %v1655_v1, %v1683_v23  ;;  %vm699_vm6 = vcmask 326656  }
  0x77   : > { %1057 = vmatpush.msra.mxu3 %v1028_v37  ;;  %vm593_vm14 = vmor %vm569_vm12, %vm583_vm11  ;;  %755 = vmatpush.msra.mxu1 %v1028_v37  ;;  %vm632_vm11 = vcmp.eq.s32.totalorder %v1655_v1, %v1686_v24 }
  0x78   : > { %vm617_vm2 = vmor %vm593_vm14, %vm607_vm10  ;;  %vm656_vm10 = vcmp.eq.s32.totalorder %v1655_v1, %v1691_v25 }
  0x79   : > { %vm641_vm3 = vmor %vm617_vm2, %vm631_vm13 }
  0x7a   : > { %vm665_vm7 = vmor %vm641_vm3, %vm655_vm1 }
  0x7b   : > { %v1025_v40 = vsel %vm665_vm7, 1.0, %v1436_v27  ;;  %vm570_vm8 = vmor %vm546_vm15, %vm560_vm0 }
  0x7c   : > { %1053 = vmatpush.msra.mxu2 %v1025_v40  ;;  %vm594_vm9 = vmor %vm570_vm8, %vm584_vm4  ;;  %727 = vmatpush.msra.mxu0 %v1025_v40 }
  0x7d   : > { %vm618_vm12 = vmor %vm594_vm9, %vm608_vm5  ;;  %1037 = vmatmul.msk.f32.vlgmr.msra.gmra.mxu2 %vm699_vm6, %v697_v38  ;;  %1035 = vmatmul.msk.f32.vlgmr.msra.gmra.mxu0 %vm699_vm6, %v695_v39 }
  0x7e   : > { %vm642_vm13 = vmor %vm618_vm12, %vm632_vm11 }
  0x7f   : > { %vm666_vm14 = vmor %vm642_vm13, %vm656_vm10 }
  0x80   : > { %v1026_v41 = vsel %vm666_vm14, 1.0, %v1436_v27 }
  0x81   : > { %1058 = vmatpush.msra.mxu3 %v1026_v41  ;;  %756 = vmatpush.msra.mxu1 %v1026_v41 }
  0x82   : > { %1041 = vmatmul.msk.f32.vlgmr.msra.gmra.mxu3 %vm699_vm6, %v697_v38  ;;  %1039 = vmatmul.msk.f32.vlgmr.msra.gmra.mxu1 %vm699_vm6, %v695_v39 }
  0x85   : > { %1038 = vmatmul.msk.f32.gmra.mxu2 %vm699_vm6, %v698_v42  ;;  %1036 = vmatmul.msk.f32.gmra.mxu0 %vm699_vm6, %v696_v43 }
  0x8a   : > { %1042 = vmatmul.msk.f32.gmra.mxu3 %vm699_vm6, %v698_v42  ;;  %1040 = vmatmul.msk.f32.gmra.mxu1 %vm699_vm6, %v696_v43 }
  0xfa   : > { %v729_v44 = vpop.f32.mrf.mxu0 }
  0xfb   : > { %770 = vst [vmem:[%s520_s28] sm:$0xff] %v729_v44 }
  0xff   : > { %v758_v45 = vpop.f32.mrf.mxu1 }
 0x100   : > { %v735_v46 = vpop.f32.mrf.mxu2  ;;  %771 = vst [vmem:[%s520_s28 + $0x8] sm:$0xff] %v758_v45 }
 0x101   : > { %774 = vst [vmem:[%s520_s28 + $0x20] sm:$0xff] %v735_v46 }
 0x102   : > { %v732_v47 = vpop.f32.mrf.mxu0 }
 0x103   : > { %772 = vst [vmem:[%s520_s28 + $0x10] sm:$0xff] %v732_v47 }
 0x105   : > { %v764_v48 = vpop.f32.mrf.mxu3 }
 0x106   : > { %775 = vst [vmem:[%s520_s28 + $0x28] sm:$0xff] %v764_v48 }
 0x107   : > { %v761_v49 = vpop.f32.mrf.mxu1 }
 0x108   : > { %v738_v50 = vpop.f32.mrf.mxu2  ;;  %773 = vst [vmem:[%s520_s28 + $0x18] sm:$0xff] %v761_v49 }
 0x109   : > { %776 = vst [vmem:[%s520_s28 + $0x30] sm:$0xff] %v738_v50 }
 0x10d   : > { %v767_v51 = vpop.f32.mrf.mxu3 }
 0x10e   : > { %777 = vst [vmem:[%s520_s28 + $0x38] sm:$0xff] %v767_v51 }
 0x10f   : > { %1364 = shalt.err (!%p1361_p4)
}
 0x110   : > { %s1437_s0 = smov 256   ;;  %s1438_s18 = smov 16  }
 0x111   : > { %1073 = dma.vmem_to_hbm [thread:$0]  (%p1577_p0), %s794_s19, 1024, %s796_s6, %s779_s24, %s1437_s0, %s1437_s0, %s1438_s18  }
 0x112 PF: > { %s1852_s23 = sld [smem:[#allocation19_spill]]  ;;  %p1096_p5 = pnand %p1005_p3, %p1581_p2 }
 0x113   : > { %s1854_s1 = sld [smem:[#allocation21_spill]] }
 0x114   : > { %p1097_p1 = pneg %p1096_p5 }
 0x118   : > { %s810_s8 = sand.u32 1, %s1852_s23  }
 0x119   : > { %s811_s3 = scalar_lea.sflag [#allocation4], %s810_s8 }
 0x11a   : > { %1406 = dma.done.wait (%p1097_p1), %s811_s3, 1024  }
 0x11b   : > { %1408 = vsyncadd (%p1097_p1), %s811_s3, 4294966272  ;;  %s30_s29 = sadd.s32 1, %s1854_s1   ;;  %s1855_s15 = sld [smem:[#allocation23_spill]] }
 0x11c   : > { %p27_p6 = scmp.ge.s32.totalorder %s30_s29, 4   ;;  %s1856_s27 = sld [smem:[#allocation20_spill]] }
 0x11d   : > { %s1857_s28 = sld [smem:[#allocation22_spill]]  ;;  %s1858_s24 = smov %s1415_s25 }
 0x11e   : > { %s1859_s25 = smov %s1419_s26  ;;  %29 = sbr.rel (!%p27_p6) target bundleno = 16 (0x10), region = 148 }
 0x121   : > { %s1860_s26 = smov %s1855_s15 }
 0x123   :  { %817 = vsyncpa [#allocation3], 1 }
 0x124   :  { %819 = vsyncpa [#allocation3 + $0x1], 1 }
 0x125   :  { %820 = vsyncpa [#allocation6], 1 }
 0x126   :  { %822 = vsyncpa [#allocation6 + $0x1], 1 }
 0x127   :  { %823 = vsyncpa [#allocation9], 1 }
 0x128   :  { %825 = vsyncpa [#allocation9 + $0x1], 1 }
 0x129   :  { %826 = vsyncpa [#allocation12], 1 }
 0x12a   :  { %827 = vsyncpa [#allocation4], 1 }
 0x12b   :  { %829 = vsyncpa [#allocation4 + $0x1], 1 }

</bundles_post_ra>
